<compile_context>
chip_gen: v7x
topology: tpu7x:2x2x1
jax: 0.10.0
libtpu: 0.0.40
codegen_flags: <defaults>
</compile_context>

<pallas_src>
import functools

import jax
import jax.numpy as jnp
from jax.experimental import pallas as pl
from jax.experimental.pallas import tpu as pltpu


def _round_up(x: int, m: int) -> int:
    return ((x + m - 1) // m) * m


def _pad2(a, rows: int, cols: int):
    """Zero-pad a 2-D array up to (rows, cols)."""
    r, c = a.shape
    if r == rows and c == cols:
        return a
    return jnp.pad(a, ((0, rows - r), (0, cols - c)))


# ---------------------------------------------------------------------------
# Kernels
# ---------------------------------------------------------------------------
def _single_block_kernel(x_ref, wt_ref, b_ref, o_ref):
    # Whole problem lives in VMEM: one MXU matmul + VPU bias/ReLU epilogue.
    # wt is (K, N): standard NN contraction, no in-kernel transpose.
    acc = jnp.dot(x_ref[...], wt_ref[...], preferred_element_type=jnp.float32)
    o_ref[...] = jnp.maximum(acc + b_ref[...], 0.0)


def _tiled_kernel(x_ref, wt_ref, b_ref, o_ref):
    # Output tile is resident across the K ("arbitrary") axis; accumulate
    # directly into it (f32 output == f32 accumulator, no scratch needed).
    k = pl.program_id(2)

    @pl.when(k == 0)
    def _():
        o_ref[...] = jnp.zeros_like(o_ref)

    o_ref[...] += jnp.dot(x_ref[...], wt_ref[...],
                          preferred_element_type=jnp.float32)

    @pl.when(k == pl.num_programs(2) - 1)
    def _():
        o_ref[...] = jnp.maximum(o_ref[...] + b_ref[...], 0.0)


# ---------------------------------------------------------------------------
# Wrapper
# ---------------------------------------------------------------------------
@functools.partial(jax.jit, static_argnames=("tm", "tn", "tk"))
def simple_model_forward(x, w, b, *, tm=512, tn=512, tk=512):
    """ReLU(x @ W^T + b) with torch.nn.Linear weight layout."""
    batch, din = x.shape
    dout, _ = w.shape

    # One-time weight preprocessing: (Dout, Din) -> (Din, Dout).  Static in
    # the torch module, so in a real serving loop this (and its padding) is
    # hoisted out of the per-step call entirely.
    wt = w.T                                   # (K, N)
    b2 = b.reshape(1, dout)

    # ---- small path: one lane-dense VMEM block, no grid / no pipeline ----
    # NOTE: this path has no DMA/compute overlap; keep the cutoff modest so
    # medium-sized problems take the pipelined tiled path below.
    m_s = _round_up(batch, 8)
    n_s = _round_up(dout, 128)
    k_s = _round_up(din, 128)
    small_bytes = 4 * (m_s * k_s + k_s * n_s + n_s + m_s * n_s)
    if small_bytes <= 4 * 1024 * 1024:
        xp = _pad2(x, m_s, k_s)
        wtp = _pad2(wt, k_s, n_s)
        bp = _pad2(b2, 1, n_s)
        out = pl.pallas_call(
            _single_block_kernel,
            out_shape=jax.ShapeDtypeStruct((m_s, n_s), jnp.float32),
            in_specs=[
                pl.BlockSpec(memory_space=pltpu.MemorySpace.VMEM),
                pl.BlockSpec(memory_space=pltpu.MemorySpace.VMEM),
                pl.BlockSpec(memory_space=pltpu.MemorySpace.VMEM),
            ],
            out_specs=pl.BlockSpec(memory_space=pltpu.MemorySpace.VMEM),
        )(xp, wtp, bp)
        return out[:batch, :dout]

    # ---- large path: tiled (M, N, K) grid, accumulate into o_ref ----------
    # Tile budget (f32, 512 tiles): 2x double-buffered 1 MiB x/w tiles +
    # 1 MiB resident out tile ~= 5-6 MiB -> safe under v7x's 32 MiB scoped
    # VMEM default (64 MiB physical); v5e/v6e have even more headroom.
    tm = min(tm, _round_up(batch, 8))
    tk = min(tk, _round_up(din, 128))

    # v7x megacore: keep >= 2 blocks on the N ("parallel") axis when Dout
    # allows, so both TensorCores get work even when the M grid is 1.
    n_full = _round_up(dout, 128)
    if n_full >= 256:
        tn = min(tn, max(128, (n_full // 2) // 128 * 128))
    else:
        tn = n_full

    m_p = _round_up(batch, tm)
    n_p = _round_up(dout, tn)
    k_p = _round_up(din, tk)     # K padding is required for correctness.
    xp = _pad2(x, m_p, k_p)
    wtp = _pad2(wt, k_p, n_p)
    bp = _pad2(b2, 1, n_p)

    cost = pl.CostEstimate(
        flops=2 * m_p * n_p * k_p,
        transcendentals=0,
        bytes_accessed=4 * (m_p * k_p + k_p * n_p + m_p * n_p),
    )

    out = pl.pallas_call(
        _tiled_kernel,
        out_shape=jax.ShapeDtypeStruct((m_p, n_p), jnp.float32),
        grid_spec=pltpu.PrefetchScalarGridSpec(
            num_scalar_prefetch=0,
            grid=(m_p // tm, n_p // tn, k_p // tk),
            in_specs=[
                pl.BlockSpec((tm, tk), lambda i, j, k: (i, k)),   # x tile
                pl.BlockSpec((tk, tn), lambda i, j, k: (k, j)),   # W^T tile
                pl.BlockSpec((1, tn), lambda i, j, k: (0, j)),    # bias tile
            ],
            out_specs=pl.BlockSpec((tm, tn), lambda i, j, k: (i, j)),
        ),
        compiler_params=pltpu.CompilerParams(
            dimension_semantics=("parallel", "parallel", "arbitrary")),
        cost_estimate=cost,
    )(xp, wtp, bp)
    return out[:batch, :dout]


# ---------------------------------------------------------------------------
# Self-test
# ---------------------------------------------------------------------------
if __name__ == "__main__":
    input_dim = 10
    output_dim = 10
    batch = 8

    key = jax.random.PRNGKey(0)
    kx, kw, kb = jax.random.split(key, 3)

    # Deterministic params (mimics nn.Linear's uniform(-1/sqrt(fan_in), +))
    bound = 1.0 / (input_dim ** 0.5)
    x = jax.random.normal(kx, (batch, input_dim), dtype=jnp.float32)
    w = jax.random.uniform(kw, (output_dim, input_dim),
                           minval=-bound, maxval=bound, dtype=jnp.float32)
    b = jax.random.uniform(kb, (output_dim,),
                           minval=-bound, maxval=bound, dtype=jnp.float32)

    out = simple_model_forward(x, w, b)
    jax.block_until_ready(out)

    # Cross-check against plain JAX reference.
    ref = jnp.maximum(x @ w.T + b, 0.0)
    assert out.shape == ref.shape, "shape mismatch vs reference"
    assert jnp.allclose(out, ref, atol=1e-5, rtol=1e-5), "mismatch vs reference"

    print("KERNEL_OK")
</pallas_src>

<mosaic_0001>
module attributes {stable_mosaic.version = 11 : i64} {
  func.func @_single_block_kernel(%arg0: memref<8x128xf32, #tpu.memory_space<vmem>>, %arg1: memref<128x128xf32, #tpu.memory_space<vmem>>, %arg2: memref<1x128xf32, #tpu.memory_space<vmem>>, %arg3: memref<8x128xf32, #tpu.memory_space<vmem>>) attributes {dimension_semantics = [], scalar_prefetch = 0 : i64, scratch_operands = 0 : i64, tpu.core_type = #tpu.core_type<tc>} {
    %c0 = arith.constant 0 : index
    %c0_0 = arith.constant 0 : index
    %0 = vector.load %arg0[%c0, %c0_0] : memref<8x128xf32, #tpu.memory_space<vmem>>, vector<8x128xf32>
    %c0_1 = arith.constant 0 : index
    %c0_2 = arith.constant 0 : index
    %1 = vector.load %arg1[%c0_1, %c0_2] : memref<128x128xf32, #tpu.memory_space<vmem>>, vector<128x128xf32>
    %cst = arith.constant dense<0.000000e+00> : vector<8x128xf32>
    %2 = tpu.matmul %0, %1, %cst {dimension_numbers = #tpu.dot_dimension_numbers<[1], [0], [0], [1], [0, 0, 1, 1], [], []>} : vector<8x128xf32>, vector<128x128xf32>, vector<8x128xf32> -> vector<8x128xf32>
    %c0_3 = arith.constant 0 : index
    %c0_4 = arith.constant 0 : index
    %3 = vector.load %arg2[%c0_3, %c0_4] : memref<1x128xf32, #tpu.memory_space<vmem>>, vector<1x128xf32>
    %4 = vector.broadcast %3 : vector<1x128xf32> to vector<8x128xf32>
    %5 = arith.addf %2, %4 : vector<8x128xf32>
    %cst_5 = arith.constant 0.000000e+00 : f32
    %6 = vector.broadcast %cst_5 : f32 to vector<8x128xf32>
    %7 = arith.maximumf %5, %6 : vector<8x128xf32>
    %c0_6 = arith.constant 0 : index
    %c0_7 = arith.constant 0 : index
    %8 = vector.load %arg3[%c0_6, %c0_7] : memref<8x128xf32, #tpu.memory_space<vmem>>, vector<8x128xf32>
    tpu.vector_store %arg3[%c0_6, %c0_7], %7 {strides = array<i32>} : memref<8x128xf32, #tpu.memory_space<vmem>>, vector<8x128xf32>,
    return
  }
}

</mosaic_0001>

<bundles_post_ra>
// kernel: simple_model_forward.1
= control target key start
LH: loop header
LB: loop body
LE: loop exit
PB: predicated region body
PF: predicated region fallthrough
CT: control target
= control target key end

     0   :  { %v230_v3 = vmov 0.0|0.0   ;;  %vm231_vm0 = vmmov 0   ;;  %v232_v6 = vmov 0.0   ;;  %s320_s0 = inlined_call_operand.vmem [shape: f32[8,128], index: 0, kind: input, shape index: {}]   ;;  %s321_s1 = inlined_call_operand.vmem [shape: f32[128,128], index: 1, kind: input, shape index: {}]   ;;  %s322_s2 = inlined_call_operand.vmem [shape: f32[1,128], index: 2, kind: input, shape index: {}]   ;;  %s323_s3 = inlined_call_operand.hbm [shape: f32[8,128], index: 3, kind: output, shape index: {}]  }
   0x1   :  { %v16_v0 = vld [vmem:[%s321_s1] sm:$0xff]  ;;  %v17_v1 = vld [vmem:[%s321_s1 + $0x8] sm:$0xff]  ;;  %v18_v2 = vld [vmem:[%s321_s1 + $0x10] sm:$0xff]  ;;  %178 = vmatprep.subr.bf16.mxu0 %v230_v3  ;;  %175 = vmatprep.mubr.msk.f32.mxu0 %vm231_vm0, %v232_v6 }
   0x2   :  { %v179_v4 = vpack.c.bf16 %v17_v1, %v16_v0  ;;  %v19_v5 = vld [vmem:[%s321_s1 + $0x18] sm:$0xff]  ;;  %v20_v8 = vld [vmem:[%s321_s1 + $0x20] sm:$0xff]  ;;  %v21_v9 = vld [vmem:[%s321_s1 + $0x28] sm:$0xff] }
   0x3   :  { %v182_v7 = vpack.c.bf16 %v19_v5, %v18_v2 }
   0x4   :  { %180 = vmatpush3.bf16.msra.mxu0 %v179_v4 }
   0x5   :  { %181 = vmatprep.subr.bf16.mxu0 %v230_v3 }
   0x6   :  { %8 = vsyncpa [#allocation3], 0  ;;  %v185_v10 = vpack.c.bf16 %v21_v9, %v20_v8  ;;  %v22_v11 = vld [vmem:[%s321_s1 + $0x30] sm:$0xff]  ;;  %v23_v12 = vld [vmem:[%s321_s1 + $0x38] sm:$0xff]  ;;  %s233_s21 = smov [#allocation2]  }
   0x7   :  { %v188_v13 = vpack.c.bf16 %v23_v12, %v22_v11  ;;  %v24_v14 = vld [vmem:[%s321_s1 + $0x40] sm:$0xff]  ;;  %v25_v15 = vld [vmem:[%s321_s1 + $0x48] sm:$0xff]  ;;  %v26_v17 = vld [vmem:[%s321_s1 + $0x50] sm:$0xff]  ;;  %s117_s22 = sshll.u32 %s233_s21, 4  ;;  %s118_s22 = int_to_ptr.vmem [resolvable:$true] %s117_s22 }
   0x8   :  { %183 = vmatpush3.bf16.msra.mxu0 %v182_v7  ;;  %v191_v16 = vpack.c.bf16 %v25_v15, %v24_v14  ;;  %v27_v18 = vld [vmem:[%s321_s1 + $0x58] sm:$0xff]  ;;  %v28_v20 = vld [vmem:[%s321_s1 + $0x60] sm:$0xff]  ;;  %v29_v21 = vld [vmem:[%s321_s1 + $0x68] sm:$0xff]  ;;  %p211_p1 = scmp.lt.s32.totalorder %s118_s22, %s118_s22 }
   0x9   :  { %184 = vmatprep.subr.bf16.mxu0 %v230_v3  ;;  %v194_v19 = vpack.c.bf16 %v27_v18, %v26_v17  ;;  %v197_v22 = vpack.c.bf16 %v29_v21, %v28_v20  ;;  %v30_v23 = vld [vmem:[%s321_s1 + $0x70] sm:$0xff]  ;;  %v31_v24 = vld [vmem:[%s321_s1 + $0x78] sm:$0xff]  ;;  %v15_v26 = vld [vmem:[%s320_s0] sm:$0xff]  ;;  %s206_s1 = scalar_lea.vmem %s118_s22, 128 }
   0xa   :  { %v200_v25 = vpack.c.bf16 %v31_v24, %v30_v23  ;;  %v125_v27 = vld [vmem:[%s322_s2] ss:$0 sm:$0xff]  ;;  %p207_p0 = scmp.ne.s32.totalorder %s118_s22, %s206_s1  ;;  %p212_p2 = scmp.lt.s32.totalorder %s206_s1, %s206_s1 }
   0xc   :  { %186 = vmatpush3.bf16.msra.mxu0 %v185_v10  ;;  %p213_p3 = por %p212_p2, %p211_p1 }
   0xd   :  { %187 = vmatprep.subr.bf16.mxu0 %v230_v3 }
   0xe   :  { %p214_p4 = pnand %p213_p3, %p207_p0 }
  0x10   :  { %189 = vmatpush3.bf16.msra.mxu0 %v188_v13 }
  0x11   :  { %190 = vmatprep.subr.bf16.mxu0 %v230_v3 }
  0x14   :  { %192 = vmatpush3.bf16.msra.mxu0 %v191_v16 }
  0x15   :  { %193 = vmatprep.subr.bf16.mxu0 %v230_v3 }
  0x18   :  { %195 = vmatpush3.bf16.msra.mxu0 %v194_v19 }
  0x19   :  { %196 = vmatprep.subr.bf16.mxu0 %v230_v3 }
  0x1c   :  { %198 = vmatpush3.bf16.msra.mxu0 %v197_v22 }
  0x1d   :  { %199 = vmatprep.subr.bf16.mxu0 %v230_v3 }
  0x20   :  { %201 = vmatpush3.bf16.msra.mxu0 %v200_v25 }
  0x23   :  { %176 = vmatmul.mubr.f32.vlgmr.msra.gmra.mrb[0].mxu0 %v15_v26 }
  0xf6   :  { %v105_v28 = vpop.f32.mrb[0].mxu0 }
  0xf7   :  { %v106_v29 = vadd.f32 %v125_v27, %v105_v28  ;;  %v177_v30 = vpop.f32.mrb[1].mxu0 }
  0xf9   :  { %v109_v31 = vmax.f32 %v106_v29, 0.0 }
  0xfb   :  { %110 = vst [vmem:[#allocation2] sm:$0xff] %v109_v31 }
  0xfc   :  { %217 = shalt.err (!%p214_p4)
}
  0xfd   :  { %s218_s24 = scalar_lea.hbm %s323_s3, 128 }
  0xfe   :  { %p219_p5 = scmp.ne.s32.totalorder %s323_s3, %s218_s24  ;;  %p222_p6 = scmp.lt.u32.totalorder %s218_s24, %s323_s3 }
 0x100   :  { %p224_p7 = pnand %p222_p6, %p219_p5 }
 0x102   :  { %227 = shalt.err (!%p224_p7)
}
 0x103   :  { %120 = dma.vmem_to_hbm [thread:$0]  %s118_s22, 128, %s323_s3, [#allocation3]  }
 0x104   :  { %228 = dma.done.wait [#allocation3], 128  }
 0x105   :  { %229 = vsyncadd [#allocation3], 4294967168 }
 0x106   :  { %124 = vsyncpa [#allocation3], 1 }

</bundles_post_ra>
